<compile_context>
chip_gen: v7x
topology: tpu7x:2x2x1
jax: 0.10.0
libtpu: 0.0.40
codegen_flags: <defaults>
</compile_context>

<pallas_src>
import jax
import jax.numpy as jnp
from jax.experimental import pallas as pl
from jax.experimental.pallas import tpu as pltpu

_LANES = 128           # vreg lane width
_MAX_TILE_ROWS = 2048  # f32[2048, 128] = 1 MiB per (double-buffered) buffer


def mlp_kernel(p_ref, x_ref, o_ref):
    # p_ref (SMEM, f32[10], scalar-prefetched):
    #   [w1_0, w1_1, w1_2, b1_0, b1_1, b1_2, w2_0, w2_1, w2_2, b2]
    # x_ref / o_ref (VMEM, f32[TB, 128]): lane-dense slabs of the batch.
    x = x_ref[...]

    # Hoisted scalar reads (scalar path); broadcasts happen once, outside
    # the unrolled FMA chain.
    w1 = (p_ref[0], p_ref[1], p_ref[2])
    b1 = (p_ref[3], p_ref[4], p_ref[5])
    w2 = (p_ref[6], p_ref[7], p_ref[8])
    b2 = p_ref[9]

    y = jnp.full(x.shape, b2, dtype=jnp.float32)
    # Hidden dim of 3 unrolled into pure VPU work — no MXU push/pop latency.
    for j in range(3):
        y = y + w2[j] * jnp.maximum(w1[j] * x + b1[j], 0.0)

    o_ref[...] = y.astype(o_ref.dtype)


def _cdiv(a, b):
    return -(-a // b)


def _round_up(a, b):
    return _cdiv(a, b) * b


def _choose_tiling(rows):
    """Return (tile_rows, rows_padded).

    - tile_rows <= _MAX_TILE_ROWS and 8-sublane aligned (or equals the full
      un-padded row count when rows <= 8, which is legal as a full-dim block).
    - rows_padded is a multiple of tile_rows; padding is bounded to a few
      sublane groups instead of the old round-up-to-512 rule.
    - >=2 tiles whenever rows >= 16 so v7x's two TensorCores both get work.
    """
    if rows <= 8:
        return rows, rows
    n_tiles = max(_cdiv(rows, _MAX_TILE_ROWS), 2 if rows >= 16 else 1)
    tile_rows = _round_up(_cdiv(rows, n_tiles), 8)
    rows_padded = _round_up(rows, tile_rows)
    return tile_rows, rows_padded


def net_forward(x, w1, b1, w2, b2):
    """x: (B, 1) float32. Weights stored [in, out]. Returns (B, 1) float32."""
    B = x.shape[0]

    # --- lane-dense layout: flatten batch into rows of 128 lanes ------------
    rows = max(1, _cdiv(B, _LANES))
    tile_rows, rows_padded = _choose_tiling(rows)
    total = rows_padded * _LANES

    flat = x.reshape(-1).astype(jnp.float32)
    needs_pad = total != B
    if needs_pad:
        # Padded tail elements compute b2 + sum_j w2_j*relu(b1_j); they are
        # discarded by the [:B] slice below (keep that invariant).
        flat = jnp.pad(flat, (0, total - B))
    x2d = flat.reshape(rows_padded, _LANES)   # metadata-only on the fast path

    # --- pack the 10 parameter scalars into one prefetched SMEM array -------
    params = jnp.concatenate(
        [w1.reshape(-1), b1.reshape(-1), w2.reshape(-1), b2.reshape(-1)]
    ).astype(jnp.float32)  # (10,)

    grid = (rows_padded // tile_rows,)

    out2d = pl.pallas_call(
        mlp_kernel,
        out_shape=jax.ShapeDtypeStruct((rows_padded, _LANES), jnp.float32),
        grid_spec=pltpu.PrefetchScalarGridSpec(
            num_scalar_prefetch=1,          # params -> SMEM once, before grid
            grid=grid,
            in_specs=[
                pl.BlockSpec((tile_rows, _LANES), lambda i, p: (i, 0)),
            ],
            out_specs=pl.BlockSpec((tile_rows, _LANES), lambda i, p: (i, 0)),
        ),
        compiler_params=pltpu.CompilerParams(
            # batch tiles are independent -> shardable across TCs on v7x.
            # Buffers stay <= ~4 MiB total, so no vmem_limit_bytes override
            # is needed even on v5e's 16 MiB default scoped VMEM.
            dimension_semantics=("parallel",),
        ),
    )(params, x2d)

    if needs_pad:
        return out2d.reshape(-1)[:B].reshape(B, 1)
    return out2d.reshape(B, 1)   # metadata-only, no extra HBM pass


def init_params(key):
    # Deterministic init mimicking PyTorch's default Linear init:
    # U(-1/sqrt(fan_in), 1/sqrt(fan_in)) for both weight and bias.
    k1, k2, k3, k4 = jax.random.split(key, 4)
    bound1 = 1.0 / jnp.sqrt(1.0)   # fan_in = 1
    bound2 = 1.0 / jnp.sqrt(3.0)   # fan_in = 3
    # Stored transposed relative to PyTorch ([in, out] instead of [out, in]).
    w1 = jax.random.uniform(k1, (1, 3), jnp.float32, -bound1, bound1)
    b1 = jax.random.uniform(k2, (1, 3), jnp.float32, -bound1, bound1)
    w2 = jax.random.uniform(k3, (3, 1), jnp.float32, -bound2, bound2)
    b2 = jax.random.uniform(k4, (1, 1), jnp.float32, -bound2, bound2)
    return w1, b1, w2, b2


if __name__ == "__main__":
    key = jax.random.PRNGKey(0)
    k_x, k_p = jax.random.split(key)
    w1, b1, w2, b2 = init_params(k_p)

    def ref_fn(x):
        return jnp.maximum(x @ w1 + b1, 0.0) @ w2 + b2

    # Small ragged batch (pad + slice path, single full-dim tile).
    B = 8
    x = jax.random.normal(k_x, (B, 1), jnp.float32)
    out = jax.block_until_ready(net_forward(x, w1, b1, w2, b2))
    assert out.shape == (B, 1)
    assert jnp.allclose(out, ref_fn(x), atol=1e-5, rtol=1e-5)

    # Lane-aligned batch (fast path: no pad, no slice, 2-tile grid).
    B2 = 32 * _LANES  # 4096 elements -> rows=32 -> two 16-row tiles
    x2 = jax.random.normal(k_x, (B2, 1), jnp.float32)
    out2 = jax.block_until_ready(net_forward(x2, w1, b1, w2, b2))
    assert out2.shape == (B2, 1)
    assert jnp.allclose(out2, ref_fn(x2), atol=1e-5, rtol=1e-5)

    print("KERNEL_OK")
</pallas_src>

<mosaic_0001>
module attributes {stable_mosaic.version = 11 : i64} {
  func.func @mlp_kernel(%arg0: i32, %arg1: memref<10xf32, #tpu.memory_space<smem>>, %arg2: memref<1x128xf32, #tpu.memory_space<vmem>>, %arg3: memref<1x128xf32, #tpu.memory_space<vmem>>) attributes {dimension_semantics = [#tpu.dimension_semantics<parallel>], iteration_bounds = array<i64: 1>, scalar_prefetch = 1 : i64, scratch_operands = 0 : i64, tpu.core_type = #tpu.core_type<tc>, window_params = [{transform_indices = @transform_0, window_bounds = array<i64: 1, 128>}, {transform_indices = @transform_1, window_bounds = array<i64: 1, 128>}]} {
    %c0 = arith.constant 0 : index
    %c0_0 = arith.constant 0 : index
    %0 = vector.load %arg2[%c0, %c0_0] : memref<1x128xf32, #tpu.memory_space<vmem>>, vector<1x128xf32>
    %c0_1 = arith.constant 0 : index
    %1 = memref.load %arg1[%c0_1] : memref<10xf32, #tpu.memory_space<smem>>
    %c1 = arith.constant 1 : index
    %2 = memref.load %arg1[%c1] : memref<10xf32, #tpu.memory_space<smem>>
    %c2 = arith.constant 2 : index
    %3 = memref.load %arg1[%c2] : memref<10xf32, #tpu.memory_space<smem>>
    %c3 = arith.constant 3 : index
    %4 = memref.load %arg1[%c3] : memref<10xf32, #tpu.memory_space<smem>>
    %c4 = arith.constant 4 : index
    %5 = memref.load %arg1[%c4] : memref<10xf32, #tpu.memory_space<smem>>
    %c5 = arith.constant 5 : index
    %6 = memref.load %arg1[%c5] : memref<10xf32, #tpu.memory_space<smem>>
    %c6 = arith.constant 6 : index
    %7 = memref.load %arg1[%c6] : memref<10xf32, #tpu.memory_space<smem>>
    %c7 = arith.constant 7 : index
    %8 = memref.load %arg1[%c7] : memref<10xf32, #tpu.memory_space<smem>>
    %c8 = arith.constant 8 : index
    %9 = memref.load %arg1[%c8] : memref<10xf32, #tpu.memory_space<smem>>
    %c9 = arith.constant 9 : index
    %10 = memref.load %arg1[%c9] : memref<10xf32, #tpu.memory_space<smem>>
    %11 = vector.broadcast %10 : f32 to vector<1x128xf32>
    %12 = vector.broadcast %1 : f32 to vector<1x128xf32>
    %13 = arith.mulf %12, %0 : vector<1x128xf32>
    %14 = vector.broadcast %4 : f32 to vector<1x128xf32>
    %15 = arith.addf %13, %14 : vector<1x128xf32>
    %cst = arith.constant 0.000000e+00 : f32
    %16 = vector.broadcast %cst : f32 to vector<1x128xf32>
    %17 = arith.maximumf %15, %16 : vector<1x128xf32>
    %18 = vector.broadcast %7 : f32 to vector<1x128xf32>
    %19 = arith.mulf %18, %17 : vector<1x128xf32>
    %20 = arith.addf %11, %19 : vector<1x128xf32>
    %21 = vector.broadcast %2 : f32 to vector<1x128xf32>
    %22 = arith.mulf %21, %0 : vector<1x128xf32>
    %23 = vector.broadcast %5 : f32 to vector<1x128xf32>
    %24 = arith.addf %22, %23 : vector<1x128xf32>
    %cst_2 = arith.constant 0.000000e+00 : f32
    %25 = vector.broadcast %cst_2 : f32 to vector<1x128xf32>
    %26 = arith.maximumf %24, %25 : vector<1x128xf32>
    %27 = vector.broadcast %8 : f32 to vector<1x128xf32>
    %28 = arith.mulf %27, %26 : vector<1x128xf32>
    %29 = arith.addf %20, %28 : vector<1x128xf32>
    %30 = vector.broadcast %3 : f32 to vector<1x128xf32>
    %31 = arith.mulf %30, %0 : vector<1x128xf32>
    %32 = vector.broadcast %6 : f32 to vector<1x128xf32>
    %33 = arith.addf %31, %32 : vector<1x128xf32>
    %cst_3 = arith.constant 0.000000e+00 : f32
    %34 = vector.broadcast %cst_3 : f32 to vector<1x128xf32>
    %35 = arith.maximumf %33, %34 : vector<1x128xf32>
    %36 = vector.broadcast %9 : f32 to vector<1x128xf32>
    %37 = arith.mulf %36, %35 : vector<1x128xf32>
    %38 = arith.addf %29, %37 : vector<1x128xf32>
    %c0_4 = arith.constant 0 : index
    %c0_5 = arith.constant 0 : index
    %39 = vector.load %arg3[%c0_4, %c0_5] : memref<1x128xf32, #tpu.memory_space<vmem>>, vector<1x128xf32>
    tpu.vector_store %arg3[%c0_4, %c0_5], %38 {strides = array<i32>} : memref<1x128xf32, #tpu.memory_space<vmem>>, vector<1x128xf32>,
    return
  }
  func.func @transform_0(%arg0: i32, %arg1: memref<10xf32, #tpu.memory_space<smem>>) -> (i32, i32) {
    %c0_i32 = arith.constant 0 : i32
    %c0_i32_0 = arith.constant 0 : i32
    return %arg0, %c0_i32 : i32, i32
  }
  func.func @transform_1(%arg0: i32, %arg1: memref<10xf32, #tpu.memory_space<smem>>) -> (i32, i32) {
    %c0_i32 = arith.constant 0 : i32
    %c0_i32_0 = arith.constant 0 : i32
    return %arg0, %c0_i32 : i32, i32
  }
}

</mosaic_0001>

<bundles_post_ra>
// kernel: tpu_custom_call.1
= control target key start
LH: loop header
LB: loop body
LE: loop exit
PB: predicated region body
PF: predicated region fallthrough
CT: control target
= control target key end

     0   :  { %s156_s0 = inlined_call_operand.hbm [shape: f32[10], index: 0, kind: input, shape index: {}]   ;;  %s157_s1 = inlined_call_operand.vmem [shape: f32[1,128], index: 1, kind: input, shape index: {}]   ;;  %s158_s2 = inlined_call_operand.hbm [shape: f32[1,128], index: 2, kind: output, shape index: {}]  }
   0x1   :  { %s76_s11 = scalar_lea.hbm %s156_s0, 16 }
   0x2   :  { %p77_p0 = scmp.ne.s32.totalorder %s156_s0, %s76_s11  ;;  %p80_p1 = scmp.lt.u32.totalorder %s76_s11, %s156_s0 }
   0x4   :  { %p82_p2 = pnand %p80_p1, %p77_p0 }
   0x6   :  { %85 = shalt.err (!%p82_p2)  }
   0x7   :  { %s112_s16 = smov [#allocation3]  }
   0x8   :  { %8 = dma.hbm_to_smem %s156_s0, 16, %s112_s16, [#allocation2] }
   0x9   :  { %108 = dma.done.wait [#allocation2], 16 }
   0xa   :  { %109 = vsyncadd [#allocation2], 4294967280 }
   0xb   :  { %10 = sfence }
   0xc   :  { %s15_s19 = sld [smem:[#allocation3]]  ;;  %s65_s20 = sld [smem:[#allocation3 + $0x1]] }
   0xd   :  { %s66_s21 = sld [smem:[#allocation3 + $0x2]]  ;;  %s67_s22 = sld [smem:[#allocation3 + $0x3]] }
   0xe   :  { %11 = vsyncpa [#allocation5], 0  ;;  %s68_s23 = sld [smem:[#allocation3 + $0x4]]  ;;  %s69_s24 = sld [smem:[#allocation3 + $0x5]]  ;;  %v14_v0 = vld [vmem:[%s157_s1] sm:$0x1] }
   0xf   :  { %s70_s25 = sld [smem:[#allocation3 + $0x6]]  ;;  %s71_s26 = sld [smem:[#allocation3 + $0x7]] }
  0x10   :  { %s72_s29 = sld [smem:[#allocation3 + $0x8]]  ;;  %s73_s30 = sld [smem:[#allocation3 + $0x9]] }
  0x11   :  { %s113_s0 = smov [#allocation4]  }
  0x12   :  { %v26_v1 = vstv %s15_s19  ;;  %v34_v2 = vstv %s65_s20  ;;  %s57_s1 = sshll.u32 %s113_s0, 4  ;;  %s58_s1 = int_to_ptr.vmem [resolvable:$true] %s57_s1 }
  0x13   :  { %v27_v3 = vmul.f32 %v26_v1, %v14_v0  ;;  %v28_v4 = vstv %s67_s22  ;;  %v35_v5 = vmul.f32 %v34_v2, %v14_v0  ;;  %v42_v6 = vstv %s66_s21  ;;  %s86_s3 = scalar_lea.vmem %s58_s1, 16  ;;  %s90_s4 = scalar_lea.vmem %s58_s1, 32 }
  0x14   :  { %v36_v7 = vstv %s68_s23  ;;  %v43_v8 = vmul.f32 %v42_v6, %v14_v0  ;;  %v44_v9 = vstv %s69_s24  ;;  %p87_p3 = scmp.ne.s32.totalorder %s58_s1, %s86_s3  ;;  %p91_p4 = scmp.lt.s32.totalorder %s58_s1, %s58_s1 }
  0x15   :  { %v29_v10 = vadd.f32 %v28_v4, %v27_v3  ;;  %v37_v11 = vadd.f32 %v36_v7, %v35_v5  ;;  %v31_v12 = vstv %s70_s25  ;;  %v39_v13 = vstv %s71_s26  ;;  %p92_p5 = scmp.lt.s32.totalorder %s90_s4, %s86_s3 }
  0x16   :  { %v45_v14 = vadd.f32 %v44_v9, %v43_v8  ;;  %v25_v17 = vstv %s73_s30  ;;  %v47_v19 = vstv %s72_s29 }
  0x17   :  { %v30_v15 = vmax.f32 %v29_v10, 0.0  ;;  %v38_v16 = vmax.f32 %v37_v11, 0.0  ;;  %p93_p6 = por %p92_p5, %p91_p4 }
  0x18   :  { %v46_v18 = vmax.f32 %v45_v14, 0.0 }
  0x19   :  { %v32_v20 = vmul.f32 %v31_v12, %v30_v15  ;;  %v40_v21 = vmul.f32 %v39_v13, %v38_v16  ;;  %p94_p7 = pnand %p93_p6, %p87_p3 }
  0x1a   :  { %v48_v23 = vmul.f32 %v47_v19, %v46_v18 }
  0x1b   :  { %v33_v22 = vadd.f32 %v32_v20, %v25_v17 }
  0x1d   :  { %v41_v24 = vadd.f32 %v40_v21, %v33_v22 }
  0x1f   :  { %v49_v25 = vadd.f32 %v48_v23, %v41_v24 }
  0x21   :  { %50 = vst [vmem:[#allocation4] sm:$0x1] %v49_v25 }
  0x22   :  { %97 = shalt.err (!%p94_p7)
}
  0x23   :  { %s98_s7 = scalar_lea.hbm %s158_s2, 16 }
  0x24   :  { %p99_p8 = scmp.ne.s32.totalorder %s158_s2, %s98_s7  ;;  %p102_p9 = scmp.lt.u32.totalorder %s98_s7, %s158_s2 }
  0x26   :  { %p104_p10 = pnand %p102_p9, %p99_p8 }
  0x28   :  { %107 = shalt.err (!%p104_p10)
}
  0x29   :  { %60 = dma.vmem_to_hbm [thread:$0]  %s58_s1, 16, %s158_s2, [#allocation5]  }
  0x2a   :  { %110 = dma.done.wait [#allocation5], 16  }
  0x2b   :  { %111 = vsyncadd [#allocation5], 4294967280 }
  0x2c   :  { %64 = vsyncpa [#allocation5], 1 }

</bundles_post_ra>
